<compile_context>
chip_gen: v6e
topology: v6e:2x2x1
jax: 0.10.0
libtpu: 0.0.40
codegen_flags: <defaults>
</compile_context>

<pallas_src>
import numpy as np
import jax
import jax.numpy as jnp
from jax.experimental import pallas as pl
from jax.experimental.pallas import tpu as pltpu

_MIB = 1024 * 1024


# ------------------------------------------------------------------ kernel ---

def _make_concat_kernel(axis):
    """Copy each input block into its static slab of the output block along
    `axis`.  Note: if the cumulative slab offsets are not 128-aligned along the
    lane axis, the stores become masked (inherent to the requested layout)."""
    def kernel(*refs):
        *x_refs, o_ref = refs
        idx = [slice(None)] * len(o_ref.shape)
        off = 0
        for x_ref in x_refs:
            c = x_ref.shape[axis]
            idx[axis] = slice(off, off + c)
            o_ref[tuple(idx)] = x_ref[...].astype(o_ref.dtype)
            off += c
    return kernel


# ----------------------------------------------------------- block planning ---

def _sublane(dtype):
    """Sublane packing granularity for a dtype (8 f32, 16 bf16/f16, 32 int8)."""
    return {4: 8, 2: 16, 1: 32}.get(jnp.dtype(dtype).itemsize, 8)


def _plan_2d(outer, total, itemsize, sub, budget):
    """Largest row tile whose double-buffered (inputs + output) blocks fit the
    VMEM budget; rounded to the output dtype's sublane packing."""
    cell = 4 * total * itemsize            # 2x(in + out) bytes per outer row
    max_rows = max(1, budget // cell)
    if max_rows >= outer:
        return outer
    rows = max(sub, (max_rows // sub) * sub)
    return min(rows, outer)


def _plan_3d(outer, tail, total, itemsize, budget):
    """(block_outer, block_tail) for the 3-D path; block_tail stays lane-dense
    (full tail or a multiple of 128)."""
    cell = 4 * total * itemsize            # 2x(in + out) bytes per (outer,tail) cell
    max_cells = max(1, budget // cell)
    if outer * tail <= max_cells:
        return outer, tail                 # whole tensor in one block
    if tail <= max_cells:
        return max(1, min(outer, max_cells // tail)), tail   # full tail, tile outer
    # tile tail in 128-lane multiples (outer tiled down to 1)
    bt = min(tail, max(128, (max_cells // 128) * 128))
    return 1, bt


# ----------------------------------------------------------------- wrapper ---

def concat(xs, dim=1, *, vmem_budget_bytes=24 * _MIB):
    """Pallas equivalent of Concat(dimension=dim).forward(xs) == torch.cat(xs, dim)."""
    xs = [jnp.asarray(x) for x in xs]
    assert len(xs) >= 1
    ndim = xs[0].ndim
    d = dim % ndim
    out_dtype = jnp.result_type(*xs)

    out_shape = list(xs[0].shape)
    out_shape[d] = int(sum(int(x.shape[d]) for x in xs))
    out_shape = tuple(out_shape)

    # torch.cat tolerates zero-width operands: drop them.
    xs = [x for x in xs if int(x.shape[d]) != 0]
    if not xs:
        return jnp.zeros(out_shape, out_dtype)
    if len(xs) == 1:
        return xs[0].astype(out_dtype).reshape(out_shape)

    outer = int(np.prod(xs[0].shape[:d], dtype=np.int64)) if d > 0 else 1
    tail = int(np.prod(xs[0].shape[d + 1:], dtype=np.int64)) if d + 1 < ndim else 1
    cs = [int(x.shape[d]) for x in xs]
    total_c = int(sum(cs))

    out_isize = jnp.dtype(out_dtype).itemsize
    itemsize = max([out_isize] + [jnp.dtype(x.dtype).itemsize for x in xs])

    bytes_accessed = int(sum(x.size * jnp.dtype(x.dtype).itemsize for x in xs)
                         + np.prod(out_shape, dtype=np.int64) * out_isize)
    cost = pl.CostEstimate(flops=0, transcendentals=0,
                           bytes_accessed=bytes_accessed)

    kernel = _make_concat_kernel(axis=1)

    if tail == 1:
        # -------- 2-D path: concat happens along the lane (last) axis --------
        xs_v = [x.reshape(outer, c) for x, c in zip(xs, cs)]
        block_rows = _plan_2d(outer, total_c, itemsize,
                              _sublane(out_dtype), vmem_budget_bytes)
        grid = (pl.cdiv(outer, block_rows),)
        in_specs = [pl.BlockSpec((block_rows, c), lambda i: (i, 0)) for c in cs]
        out_spec = pl.BlockSpec((block_rows, total_c), lambda i: (i, 0))
        flat_out_shape = (outer, total_c)
        footprint = 2 * block_rows * (
            sum(c * jnp.dtype(x.dtype).itemsize for c, x in zip(cs, xs))
            + total_c * out_isize)
        semantics = ("parallel",)
    else:
        # -------- 3-D path: (outer, C_i, tail); 2-D grid over (outer, tail) --
        xs_v = [x.reshape(outer, c, tail) for x, c in zip(xs, cs)]
        block_outer, block_tail = _plan_3d(outer, tail, total_c, itemsize,
                                           vmem_budget_bytes)
        grid = (pl.cdiv(outer, block_outer), pl.cdiv(tail, block_tail))
        in_specs = [pl.BlockSpec((block_outer, c, block_tail),
                                 lambda i, j: (i, 0, j)) for c in cs]
        out_spec = pl.BlockSpec((block_outer, total_c, block_tail),
                                lambda i, j: (i, 0, j))
        flat_out_shape = (outer, total_c, tail)
        footprint = 2 * block_outer * block_tail * (
            sum(c * jnp.dtype(x.dtype).itemsize for c, x in zip(cs, xs))
            + total_c * out_isize)
        semantics = ("parallel", "parallel")

    # Explicit scoped-VMEM limit: >= 32 MiB (v5e default is only 16 MiB) but
    # never above v7x's 64 MiB physical VMEM per TensorCore.
    vmem_limit = int(min(64 * _MIB, max(32 * _MIB, footprint + 8 * _MIB)))

    out = pl.pallas_call(
        kernel,
        out_shape=jax.ShapeDtypeStruct(flat_out_shape, out_dtype),
        grid=grid,
        in_specs=in_specs,
        out_specs=out_spec,
        cost_estimate=cost,
        compiler_params=pltpu.CompilerParams(
            dimension_semantics=semantics,
            vmem_limit_bytes=vmem_limit),
    )(*xs_v)

    return out.reshape(out_shape)


# -------------------------------------------------------------------- main ---

if __name__ == "__main__":
    key = jax.random.PRNGKey(0)
    k = jax.random.split(key, 8)

    # ---- case 1: the YOLO use-case — channel concat (dimension=1) on NCHW ----
    x0 = jax.random.normal(k[0], (2, 4, 16, 16), jnp.float32)
    x1 = jax.random.normal(k[1], (2, 8, 16, 16), jnp.float32)
    x2 = jax.random.normal(k[2], (2, 4, 16, 16), jnp.float32)
    out = jax.block_until_ready(concat([x0, x1, x2], dim=1))
    ref = jnp.concatenate([x0, x1, x2], axis=1)
    assert out.shape == (2, 16, 16, 16)
    np.testing.assert_array_equal(np.asarray(out), np.asarray(ref))

    # ---- case 2: a different concat axis (dim=2) ----
    y0 = jax.random.normal(k[3], (2, 4, 16, 16), jnp.float32)
    y1 = jax.random.normal(k[4], (2, 4, 8, 16), jnp.float32)
    out2 = jax.block_until_ready(concat([y0, y1], dim=2))
    ref2 = jnp.concatenate([y0, y1], axis=2)
    np.testing.assert_array_equal(np.asarray(out2), np.asarray(ref2))

    # ---- case 3: last-axis concat, tiny budget -> multi-step row-tiled grid ----
    z0 = jax.random.normal(k[5], (4, 8, 64, 16), jnp.float32)
    z1 = jax.random.normal(k[6], (4, 8, 64, 48), jnp.float32)
    out3 = jax.block_until_ready(
        concat([z0, z1], dim=-1, vmem_budget_bytes=256 * 1024))
    ref3 = jnp.concatenate([z0, z1], axis=-1)
    np.testing.assert_array_equal(np.asarray(out3), np.asarray(ref3))

    # ---- case 4: mixed dtypes -> cast rides the in-kernel copy (no HBM pass) ----
    w0 = jax.random.normal(k[7], (2, 4, 16, 16), jnp.float32)
    w1 = jax.random.normal(k[0], (2, 4, 16, 16), jnp.float32).astype(jnp.bfloat16)
    out4 = jax.block_until_ready(concat([w0, w1], dim=1))
    ref4 = jnp.concatenate([w0, w1.astype(jnp.float32)], axis=1)
    np.testing.assert_array_equal(np.asarray(out4), np.asarray(ref4))

    # ---- case 5: small outer / large tail, tiny budget -> tail-tiled 2-D grid ----
    v0 = jax.random.normal(k[1], (2, 4, 32, 64), jnp.float32)
    v1 = jax.random.normal(k[2], (2, 8, 32, 64), jnp.float32)
    out5 = jax.block_until_ready(
        concat([v0, v1], dim=1, vmem_budget_bytes=128 * 1024))
    ref5 = jnp.concatenate([v0, v1], axis=1)
    np.testing.assert_array_equal(np.asarray(out5), np.asarray(ref5))

    print("KERNEL_OK")
</pallas_src>

<mosaic_0001>
module attributes {stable_mosaic.version = 11 : i64} {
  func.func @kernel(%arg0: i32, %arg1: i32, %arg2: memref<2x4x256xf32, #tpu.memory_space<vmem>>, %arg3: memref<2x8x256xf32, #tpu.memory_space<vmem>>, %arg4: memref<2x4x256xf32, #tpu.memory_space<vmem>>, %arg5: memref<2x16x256xf32, #tpu.memory_space<vmem>>) attributes {dimension_semantics = [#tpu.dimension_semantics<parallel>, #tpu.dimension_semantics<parallel>], iteration_bounds = array<i64: 1, 1>, scalar_prefetch = 0 : i64, scratch_operands = 0 : i64, tpu.core_type = #tpu.core_type<tc>, window_params = [{transform_indices = @transform_0, window_bounds = array<i64: 2, 4, 256>}, {transform_indices = @transform_1, window_bounds = array<i64: 2, 8, 256>}, {transform_indices = @transform_2, window_bounds = array<i64: 2, 4, 256>}, {transform_indices = @transform_3, window_bounds = array<i64: 2, 16, 256>}]} {
    %c0 = arith.constant 0 : index
    %c0_0 = arith.constant 0 : index
    %c0_1 = arith.constant 0 : index
    %0 = vector.load %arg2[%c0, %c0_0, %c0_1] : memref<2x4x256xf32, #tpu.memory_space<vmem>>, vector<2x4x256xf32>
    %c0_2 = arith.constant 0 : index
    %c0_3 = arith.constant 0 : index
    %c0_4 = arith.constant 0 : index
    %1 = vector.load %arg5[%c0_2, %c0_3, %c0_4] : memref<2x16x256xf32, #tpu.memory_space<vmem>>, vector<2x4x256xf32>
    tpu.vector_store %arg5[%c0_2, %c0_3, %c0_4], %0 {strides = array<i32>} : memref<2x16x256xf32, #tpu.memory_space<vmem>>, vector<2x4x256xf32>,
    %c0_5 = arith.constant 0 : index
    %c0_6 = arith.constant 0 : index
    %c0_7 = arith.constant 0 : index
    %2 = vector.load %arg3[%c0_5, %c0_6, %c0_7] : memref<2x8x256xf32, #tpu.memory_space<vmem>>, vector<2x8x256xf32>
    %c0_8 = arith.constant 0 : index
    %c4 = arith.constant 4 : index
    %c0_9 = arith.constant 0 : index
    %3 = vector.load %arg5[%c0_8, %c4, %c0_9] : memref<2x16x256xf32, #tpu.memory_space<vmem>>, vector<2x8x256xf32>
    tpu.vector_store %arg5[%c0_8, %c4, %c0_9], %2 {strides = array<i32>} : memref<2x16x256xf32, #tpu.memory_space<vmem>>, vector<2x8x256xf32>,
    %c0_10 = arith.constant 0 : index
    %c0_11 = arith.constant 0 : index
    %c0_12 = arith.constant 0 : index
    %4 = vector.load %arg4[%c0_10, %c0_11, %c0_12] : memref<2x4x256xf32, #tpu.memory_space<vmem>>, vector<2x4x256xf32>
    %c0_13 = arith.constant 0 : index
    %c12 = arith.constant 12 : index
    %c0_14 = arith.constant 0 : index
    %5 = vector.load %arg5[%c0_13, %c12, %c0_14] : memref<2x16x256xf32, #tpu.memory_space<vmem>>, vector<2x4x256xf32>
    tpu.vector_store %arg5[%c0_13, %c12, %c0_14], %4 {strides = array<i32>} : memref<2x16x256xf32, #tpu.memory_space<vmem>>, vector<2x4x256xf32>,
    return
  }
  func.func @transform_0(%arg0: i32, %arg1: i32) -> (i32, i32, i32) {
    %c0_i32 = arith.constant 0 : i32
    %c0_i32_0 = arith.constant 0 : i32
    return %arg0, %c0_i32, %arg1 : i32, i32, i32
  }
  func.func @transform_1(%arg0: i32, %arg1: i32) -> (i32, i32, i32) {
    %c0_i32 = arith.constant 0 : i32
    %c0_i32_0 = arith.constant 0 : i32
    return %arg0, %c0_i32, %arg1 : i32, i32, i32
  }
  func.func @transform_2(%arg0: i32, %arg1: i32) -> (i32, i32, i32) {
    %c0_i32 = arith.constant 0 : i32
    %c0_i32_0 = arith.constant 0 : i32
    return %arg0, %c0_i32, %arg1 : i32, i32, i32
  }
  func.func @transform_3(%arg0: i32, %arg1: i32) -> (i32, i32, i32) {
    %c0_i32 = arith.constant 0 : i32
    %c0_i32_0 = arith.constant 0 : i32
    return %arg0, %c0_i32, %arg1 : i32, i32, i32
  }
}

</mosaic_0001>

<bundles_post_ra>
// kernel: tpu_custom_call.1
= control target key start
LH: loop header
LB: loop body
LE: loop exit
PB: predicated region body
PF: predicated region fallthrough
CT: control target
= control target key end

     0   :  { %8 = vsyncpa [#allocation3], 0  ;;  %s266_s0 = inlined_call_operand.hbm [shape: f32[2,4,256], index: 0, kind: input, shape index: {}]   ;;  %s267_s1 = inlined_call_operand.hbm [shape: f32[2,8,256], index: 1, kind: input, shape index: {}]   ;;  %s268_s2 = inlined_call_operand.hbm [shape: f32[2,4,256], index: 2, kind: input, shape index: {}]   ;;  %s269_s3 = inlined_call_operand.hbm [shape: f32[2,16,256], index: 3, kind: output, shape index: {}]  }
   0x1   :  { %9 = vsyncpa [#allocation6], 0 }
   0x2   :  { %10 = vsyncpa [#allocation4], 0  ;;  %s220_s12 = smov [#allocation5]  }
   0x3   :  { %s28_s13 = sshll.u32 %s220_s12, 4  ;;  %s29_s13 = int_to_ptr.vmem [resolvable:$true] %s28_s13 }
   0x4   :  { %s142_s14 = scalar_lea.vmem %s29_s13, 512  ;;  %p147_p1 = scmp.lt.s32.totalorder %s29_s13, %s29_s13 }
   0x5   :  { %p143_p0 = scmp.ne.s32.totalorder %s29_s13, %s142_s14  ;;  %p148_p2 = scmp.lt.s32.totalorder %s142_s14, %s142_s14 }
   0x7   :  { %p149_p3 = por %p148_p2, %p147_p1 }
   0x9   :  { %p150_p4 = pnand %p149_p3, %p143_p0 }
   0xb   :  { %153 = shalt.err (!%p150_p4)
}
   0xc   :  { %s221_s15 = smov 256   ;;  %s222_s16 = smov 16  }
   0xd   :  { %34 = dma.hbm_to_vmem [thread:$0]  %s267_s1, 512, %s29_s13, [#allocation6], %s221_s15, %s221_s15, %s222_s16  }
   0xe   :  { %s223_s19 = smov [#allocation2]  }
   0xf   :  { %s16_s20 = sshll.u32 %s223_s19, 4  ;;  %s17_s20 = int_to_ptr.vmem [resolvable:$true] %s16_s20 }
  0x10   :  { %s162_s21 = scalar_lea.vmem %s17_s20, 256  ;;  %p167_p6 = scmp.lt.s32.totalorder %s17_s20, %s17_s20 }
  0x11   :  { %p163_p5 = scmp.ne.s32.totalorder %s17_s20, %s162_s21  ;;  %p168_p7 = scmp.lt.s32.totalorder %s162_s21, %s162_s21 }
  0x13   :  { %p169_p8 = por %p168_p7, %p167_p6 }
  0x15   :  { %p170_p9 = pnand %p169_p8, %p163_p5 }
  0x17   :  { %173 = shalt.err (!%p170_p9)
}
  0x18   :  { %s224_s22 = smov 128   ;;  %s225_s23 = smov 8  }
  0x19   :  { %22 = dma.hbm_to_vmem [thread:$0]  %s266_s0, 256, %s17_s20, [#allocation3], %s224_s22, %s224_s22, %s225_s23  }
  0x1a   :  { %s226_s26 = smov [#allocation7]  }
  0x1b   :  { %s40_s27 = sshll.u32 %s226_s26, 4  ;;  %s41_s27 = int_to_ptr.vmem [resolvable:$true] %s40_s27 }
  0x1c   :  { %s182_s1 = scalar_lea.vmem %s41_s27, 256  ;;  %p187_p11 = scmp.lt.s32.totalorder %s41_s27, %s41_s27 }
  0x1d   :  { %p183_p10 = scmp.ne.s32.totalorder %s41_s27, %s182_s1  ;;  %p188_p12 = scmp.lt.s32.totalorder %s182_s1, %s182_s1 }
  0x1f   :  { %p189_p13 = por %p188_p12, %p187_p11 }
  0x21   :  { %p190_p0 = pnand %p189_p13, %p183_p10 }
  0x23   :  { %193 = shalt.err (!%p190_p0)
}
  0x24   :  { %46 = dma.hbm_to_vmem [thread:$0]  %s268_s2, 256, %s41_s27, [#allocation6], %s224_s22, %s224_s22, %s225_s23  }
  0x25   :  { %214 = dma.done.wait [#allocation3], 256  }
  0x26   :  { %215 = vsyncadd [#allocation3], 4294967040 }
  0x27   :  { %216 = dma.done.wait [#allocation6], 768  }
  0x28   :  { %217 = vsyncadd [#allocation6], 4294966528  ;;  %v56_v0 = vld [vmem:[#allocation2] sm:$0xff]  ;;  %v57_v1 = vld [vmem:[#allocation2 + $0x8] sm:$0xff]  ;;  %s227_s0 = smov [#allocation8]  }
  0x29   :  { %v68_v2 = vld [vmem:[#allocation5] sm:$0xff]  ;;  %s109_s30 = sshll.u32 %s227_s0, 4  ;;  %64 = vst [vmem:[#allocation8] sm:$0xf] %v56_v0  ;;  %v60_v3 = vcombine.high %v56_v0, %v56_v0  ;;  %66 = vst [vmem:[#allocation8 + $0x20] sm:$0xf] %v57_v1  ;;  %v61_v4 = vcombine.high %v57_v1, %v57_v1  ;;  %s110_s30 = int_to_ptr.vmem [resolvable:$true] %s109_s30 }
  0x2a   :  { %v76_v5 = vrot.slane %v68_v2, 4  ;;  %v69_v6 = vld [vmem:[#allocation5 + $0x8] sm:$0xff]  ;;  %v70_v7 = vld [vmem:[#allocation5 + $0x10] sm:$0xff]  ;;  %v71_v8 = vld [vmem:[#allocation5 + $0x18] sm:$0xff]  ;;  %s194_s2 = scalar_lea.vmem %s110_s30, 1024  ;;  %p199_p2 = scmp.lt.s32.totalorder %s110_s30, %s110_s30 }
  0x2b   :  { %v77_v9 = vrot.slane %v69_v6, 4  ;;  %v78_v10 = vrot.slane %v70_v7, 4  ;;  %v79_v11 = vrot.slane %v71_v8, 4  ;;  %v92_v12 = vld [vmem:[#allocation7] sm:$0xff]  ;;  %v93_v13 = vld [vmem:[#allocation7 + $0x8] sm:$0xff]  ;;  %p195_p1 = scmp.ne.s32.totalorder %s110_s30, %s194_s2  ;;  %p200_p3 = scmp.lt.s32.totalorder %s194_s2, %s194_s2 }
  0x2c   :  { %65 = vst [vmem:[#allocation8 + $0x8] sm:$0xf] %v60_v3  ;;  %67 = vst [vmem:[#allocation8 + $0x28] sm:$0xf] %v61_v4  ;;  %v96_v14 = vcombine.low %v92_v12, %v92_v12  ;;  %v97_v15 = vcombine.low %v93_v13, %v93_v13 }
  0x2d   :  { %84 = vst [vmem:[#allocation8 + $0x10] ss:$-12 sps:$4 sm:$0xff] %v76_v5   ;;  %101 = vst [vmem:[#allocation8 + $0x18] sm:$0xf0] %v92_v12  ;;  %p201_p4 = por %p200_p3, %p199_p2 }
  0x2e   :  { %103 = vst [vmem:[#allocation8 + $0x38] sm:$0xf0] %v93_v13  ;;  %85 = vst [vmem:[#allocation8 + $0x18] ss:$-12 sps:$4 sm:$0xff] %v77_v9  }
  0x2f   :  { %88 = vst [vmem:[#allocation8 + $0x30] ss:$-12 sps:$4 sm:$0xff] %v78_v10   ;;  %89 = vst [vmem:[#allocation8 + $0x38] ss:$-12 sps:$4 sm:$0xff] %v79_v11   ;;  %p202_p5 = pnand %p201_p4, %p195_p1 }
  0x30   :  { %100 = vst [vmem:[#allocation8 + $0x10] sm:$0xf0] %v96_v14  ;;  %102 = vst [vmem:[#allocation8 + $0x30] sm:$0xf0] %v97_v15 }
  0x31   :  { %205 = shalt.err (!%p202_p5)
}
  0x32   :  { %115 = dma.vmem_to_hbm [thread:$0]  %s110_s30, 1024, %s269_s3, [#allocation4], %s221_s15, %s221_s15, %s222_s16  }
  0x33   :  { %218 = dma.done.wait [#allocation4], 1024  }
  0x34   :  { %219 = vsyncadd [#allocation4], 4294966272 }
  0x35   :  { %119 = vsyncpa [#allocation3], 1 }
  0x36   :  { %120 = vsyncpa [#allocation6], 1 }
  0x37   :  { %121 = vsyncpa [#allocation4], 1 }

</bundles_post_ra>
